<compile_context>
chip_gen: v7x
topology: tpu7x:2x2x1
jax: 0.10.0
libtpu: 0.0.40
codegen_flags: <defaults>
</compile_context>

<pallas_src>
import functools

import jax
import jax.numpy as jnp
from jax.experimental import pallas as pl
from jax.experimental.pallas import tpu as pltpu


_LANE = 128                      # f32 lane width
_SUBLANE = 8                     # f32 sublane packing
_VMEM_BUFFER_BUDGET = 24 << 20   # double-buffered in+out bytes per step budget


def _cdiv(a, b):
    return (a + b - 1) // b


def _round_up(a, b):
    return _cdiv(a, b) * b


def _buildinlen_kernel(params_ref, f_ref, o_ref, *, D, T):
    # params_ref: SMEM f32[(D+2)*T] -> [W (d-major: W[d,t] at d*T+t), bias, buff]
    # f_ref:      VMEM f32[D+3, TBS, 128] rows: x^T (D rows), lx0, sum(lx1), sum(lx2)
    # o_ref:      VMEM f32[T, TBS, 128]
    xs = [f_ref[d] for d in range(D)]                    # dense (TBS, 128) tiles
    t = f_ref[D] * f_ref[D + 1] + f_ref[D + 2]           # lx0*sum(lx1) + sum(lx2)
    for tt in range(T):                                   # T, D tiny & static -> unrolled
        z = params_ref[D * T + tt] + params_ref[tt] * xs[0]      # bias + w0*x0
        for d in range(1, D):
            z = z + params_ref[d * T + tt] * xs[d]
        buff_tt = params_ref[D * T + T + tt]
        o_ref[tt] = jax.nn.sigmoid(z) - buff_tt + t       # direct per-target store


def build_in_len(x, lx, weight, bias, buff):
    """x: (B, D); lx: list of (B, k_i) with lx[0] of width 1; weight: (D, T)
    (i.e. torch Linear.weight transposed); bias, buff: (T,). Returns (B, T)."""
    x = x.astype(jnp.float32)
    B, D = x.shape
    T = weight.shape[1]
    assert lx[0].shape[1] == 1, "BuildInLen expects lx[0] of shape (B, 1)"

    # ---- fused, transposed input slab (D+3, B), built in one fused pass -----
    s1 = jnp.sum(lx[1].astype(jnp.float32), axis=1)[None, :]          # (1, B)
    if len(lx) > 2:   # Python-level branch, resolved at trace time (like torch)
        s2 = jnp.sum(lx[2].astype(jnp.float32), axis=1)[None, :]      # (1, B)
    else:
        s2 = jnp.zeros((1, B), jnp.float32)
    fused_t = jnp.concatenate(
        [x.T, lx[0].astype(jnp.float32).T, s1, s2], axis=0)           # (D+3, B)

    # ---- batch tiling: lane-dense (128) and sublane-dense (TBS) blocks ------
    S0 = max(1, _cdiv(B, _LANE))                 # sublane-blocks of 128 lanes
    per_sb_bytes = _LANE * (D + 3 + T) * 4       # one sublane-block, input+output
    max_tbs = max(_SUBLANE,
                  (_VMEM_BUFFER_BUDGET // (2 * per_sb_bytes)) // _SUBLANE * _SUBLANE)
    n_steps = _cdiv(S0, max_tbs)
    if n_steps == 1 and S0 >= 64:
        n_steps = 2                              # give v7x's 2nd TensorCore work
    if n_steps > 1 and n_steps % 2:
        n_steps += 1                             # even grid for megacore split
    if n_steps == 1:
        TBS = S0                                 # block == full dim (always legal)
    else:
        TBS = _round_up(_cdiv(S0, n_steps), _SUBLANE)
    Sp = n_steps * TBS
    Bp = Sp * _LANE
    fused = jnp.pad(fused_t, ((0, 0), (0, Bp - B))).reshape(D + 3, Sp, _LANE)

    params = jnp.concatenate([
        weight.astype(jnp.float32).reshape(-1),  # W[d, t] at index d*T + t
        bias.astype(jnp.float32).reshape(-1),
        buff.astype(jnp.float32).reshape(-1),
    ])                                           # ((D+2)*T,)

    kernel = functools.partial(_buildinlen_kernel, D=D, T=T)
    step_bytes = (D + 3 + T) * TBS * _LANE * 4
    vmem_limit = int(min(max(2 * step_bytes + (4 << 20), 16 << 20), 48 << 20))

    out = pl.pallas_call(
        kernel,
        out_shape=jax.ShapeDtypeStruct((T, Sp, _LANE), jnp.float32),
        grid_spec=pltpu.PrefetchScalarGridSpec(
            num_scalar_prefetch=1,               # params -> SMEM, before the grid
            grid=(n_steps,),
            in_specs=[pl.BlockSpec((D + 3, TBS, _LANE), lambda i, p: (0, i, 0))],
            out_specs=pl.BlockSpec((T, TBS, _LANE), lambda i, p: (0, i, 0)),
        ),
        compiler_params=pltpu.CompilerParams(
            dimension_semantics=("parallel",),
            vmem_limit_bytes=vmem_limit),
        cost_estimate=pl.CostEstimate(
            flops=Bp * T * (2 * D + 4),
            transcendentals=Bp * T,
            bytes_accessed=(fused.size + Sp * _LANE * T + params.size) * 4),
    )(params, fused)

    return out.reshape(T, Bp)[:, :B].T           # back to (B, T)


if __name__ == "__main__":
    n_dims, n_targets = 3, 1

    # Deterministic synthetic parameters (no checkpoint load).
    key = jax.random.PRNGKey(0)
    kw, kb = jax.random.split(key)
    weight = jax.random.normal(kw, (n_dims, n_targets), dtype=jnp.float32) * 0.1
    bias = jax.random.normal(kb, (n_targets,), dtype=jnp.float32) * 0.1
    buff = jnp.full((n_targets,), 0.5, dtype=jnp.float32)

    def ref_forward(x, lx):
        t = lx[0] * jnp.sum(lx[1], axis=1, keepdims=True)
        if len(lx) > 2:
            t = t + jnp.sum(lx[2], axis=1, keepdims=True)
        return jax.nn.sigmoid(x @ weight + bias) - buff + t

    fwd = jax.jit(build_in_len)   # fuse the wrapper glue (transpose/concat/pad)

    cases = []
    # Case 1: batch=4, len(lx)=2  (mirrors the module's first _inputs entry).
    B = 4
    x1 = (jnp.arange(B * n_dims, dtype=jnp.float32) + 10.0).reshape(B, n_dims)
    lx1 = [(jnp.arange(B, dtype=jnp.float32) + 10.0).reshape(B, 1),
           (jnp.arange(B * 2, dtype=jnp.float32) + 10.0).reshape(B, 2)]
    cases.append((x1, lx1))
    # Case 2: batch=8, len(lx)=3  (second _inputs entry, exercises the branch).
    B = 8
    x2 = (jnp.arange(B * n_dims, dtype=jnp.float32) + 10.0).reshape(B, n_dims)
    lx2 = [(jnp.arange(B, dtype=jnp.float32) + 10.0).reshape(B, 1),
           (jnp.arange(B * 2, dtype=jnp.float32) + 10.0).reshape(B, 2),
           (jnp.arange(B * 3, dtype=jnp.float32) + 10.0).reshape(B, 3)]
    cases.append((x2, lx2))
    # Case 3: batch=300 (dynamic batch dim) — exercises multi-sublane-block
    # tiling and lane padding while staying small.
    B = 300
    k1, k2, k3 = jax.random.split(jax.random.PRNGKey(1), 3)
    x3 = jax.random.normal(k1, (B, n_dims), dtype=jnp.float32)
    lx3 = [jax.random.normal(k2, (B, 1), dtype=jnp.float32),
           jax.random.normal(k3, (B, 2), dtype=jnp.float32)]
    cases.append((x3, lx3))

    for x, lx in cases:
        out = jax.block_until_ready(fwd(x, lx, weight, bias, buff))
        ref = ref_forward(x, lx)
        assert out.shape == (x.shape[0], n_targets), out.shape
        assert jnp.allclose(out, ref, atol=1e-5, rtol=1e-5), (out, ref)

    print("KERNEL_OK")
</pallas_src>

<mosaic_0001>
module attributes {stable_mosaic.version = 11 : i64} {
  func.func @_buildinlen_kernel(%arg0: i32, %arg1: memref<5xf32, #tpu.memory_space<smem>>, %arg2: memref<6x1x128xf32, #tpu.memory_space<vmem>>, %arg3: memref<1x1x128xf32, #tpu.memory_space<vmem>>) attributes {dimension_semantics = [#tpu.dimension_semantics<parallel>], iteration_bounds = array<i64: 1>, scalar_prefetch = 1 : i64, scratch_operands = 0 : i64, tpu.core_type = #tpu.core_type<tc>, window_params = [{transform_indices = @transform_0, window_bounds = array<i64: 6, 1, 128>}, {transform_indices = @transform_1, window_bounds = array<i64: 1, 1, 128>}]} {
    %c0 = arith.constant 0 : index
    %c0_0 = arith.constant 0 : index
    %c0_1 = arith.constant 0 : index
    %0 = vector.load %arg2[%c0, %c0_0, %c0_1] : memref<6x1x128xf32, #tpu.memory_space<vmem>>, vector<1x1x128xf32>
    %1 = vector.shape_cast %0 : vector<1x1x128xf32> to vector<1x128xf32>
    %c1 = arith.constant 1 : index
    %c0_2 = arith.constant 0 : index
    %c0_3 = arith.constant 0 : index
    %2 = vector.load %arg2[%c1, %c0_2, %c0_3] : memref<6x1x128xf32, #tpu.memory_space<vmem>>, vector<1x1x128xf32>
    %3 = vector.shape_cast %2 : vector<1x1x128xf32> to vector<1x128xf32>
    %c2 = arith.constant 2 : index
    %c0_4 = arith.constant 0 : index
    %c0_5 = arith.constant 0 : index
    %4 = vector.load %arg2[%c2, %c0_4, %c0_5] : memref<6x1x128xf32, #tpu.memory_space<vmem>>, vector<1x1x128xf32>
    %5 = vector.shape_cast %4 : vector<1x1x128xf32> to vector<1x128xf32>
    %c3 = arith.constant 3 : index
    %c0_6 = arith.constant 0 : index
    %c0_7 = arith.constant 0 : index
    %6 = vector.load %arg2[%c3, %c0_6, %c0_7] : memref<6x1x128xf32, #tpu.memory_space<vmem>>, vector<1x1x128xf32>
    %7 = vector.shape_cast %6 : vector<1x1x128xf32> to vector<1x128xf32>
    %c4 = arith.constant 4 : index
    %c0_8 = arith.constant 0 : index
    %c0_9 = arith.constant 0 : index
    %8 = vector.load %arg2[%c4, %c0_8, %c0_9] : memref<6x1x128xf32, #tpu.memory_space<vmem>>, vector<1x1x128xf32>
    %9 = vector.shape_cast %8 : vector<1x1x128xf32> to vector<1x128xf32>
    %10 = arith.mulf %7, %9 : vector<1x128xf32>
    %c5 = arith.constant 5 : index
    %c0_10 = arith.constant 0 : index
    %c0_11 = arith.constant 0 : index
    %11 = vector.load %arg2[%c5, %c0_10, %c0_11] : memref<6x1x128xf32, #tpu.memory_space<vmem>>, vector<1x1x128xf32>
    %12 = vector.shape_cast %11 : vector<1x1x128xf32> to vector<1x128xf32>
    %13 = arith.addf %10, %12 : vector<1x128xf32>
    %c3_12 = arith.constant 3 : index
    %14 = memref.load %arg1[%c3_12] : memref<5xf32, #tpu.memory_space<smem>>
    %c0_13 = arith.constant 0 : index
    %15 = memref.load %arg1[%c0_13] : memref<5xf32, #tpu.memory_space<smem>>
    %16 = vector.broadcast %15 : f32 to vector<1x128xf32>
    %17 = arith.mulf %16, %1 : vector<1x128xf32>
    %18 = vector.broadcast %14 : f32 to vector<1x128xf32>
    %19 = arith.addf %18, %17 : vector<1x128xf32>
    %c1_14 = arith.constant 1 : index
    %20 = memref.load %arg1[%c1_14] : memref<5xf32, #tpu.memory_space<smem>>
    %21 = vector.broadcast %20 : f32 to vector<1x128xf32>
    %22 = arith.mulf %21, %3 : vector<1x128xf32>
    %23 = arith.addf %19, %22 : vector<1x128xf32>
    %c2_15 = arith.constant 2 : index
    %24 = memref.load %arg1[%c2_15] : memref<5xf32, #tpu.memory_space<smem>>
    %25 = vector.broadcast %24 : f32 to vector<1x128xf32>
    %26 = arith.mulf %25, %5 : vector<1x128xf32>
    %27 = arith.addf %23, %26 : vector<1x128xf32>
    %c4_16 = arith.constant 4 : index
    %28 = memref.load %arg1[%c4_16] : memref<5xf32, #tpu.memory_space<smem>>
    %29 = arith.negf %27 : vector<1x128xf32>
    %30 = math.exp %29 : vector<1x128xf32>
    %cst = arith.constant 1.000000e+00 : f32
    %31 = vector.broadcast %cst : f32 to vector<1x128xf32>
    %32 = arith.addf %31, %30 : vector<1x128xf32>
    %33 = arith.divf %31, %32 : vector<1x128xf32>
    %34 = vector.broadcast %28 : f32 to vector<1x128xf32>
    %35 = arith.subf %33, %34 : vector<1x128xf32>
    %36 = arith.addf %35, %13 : vector<1x128xf32>
    %c0_17 = arith.constant 0 : index
    %c0_18 = arith.constant 0 : index
    %c0_19 = arith.constant 0 : index
    %37 = vector.load %arg3[%c0_17, %c0_18, %c0_19] : memref<1x1x128xf32, #tpu.memory_space<vmem>>, vector<1x1x128xf32>
    %38 = vector.shape_cast %37 : vector<1x1x128xf32> to vector<1x128xf32>
    %39 = vector.shape_cast %36 : vector<1x128xf32> to vector<1x1x128xf32>
    tpu.vector_store %arg3[%c0_17, %c0_18, %c0_19], %39 {strides = array<i32>} : memref<1x1x128xf32, #tpu.memory_space<vmem>>, vector<1x1x128xf32>,
    return
  }
  func.func @transform_0(%arg0: i32, %arg1: memref<5xf32, #tpu.memory_space<smem>>) -> (i32, i32, i32) {
    %c0_i32 = arith.constant 0 : i32
    %c0_i32_0 = arith.constant 0 : i32
    %c0_i32_1 = arith.constant 0 : i32
    return %c0_i32, %arg0, %c0_i32_0 : i32, i32, i32
  }
  func.func @transform_1(%arg0: i32, %arg1: memref<5xf32, #tpu.memory_space<smem>>) -> (i32, i32, i32) {
    %c0_i32 = arith.constant 0 : i32
    %c0_i32_0 = arith.constant 0 : i32
    %c0_i32_1 = arith.constant 0 : i32
    return %c0_i32, %arg0, %c0_i32_0 : i32, i32, i32
  }
}

</mosaic_0001>

<bundles_post_ra>
// kernel: build_in_len.1
= control target key start
LH: loop header
LB: loop body
LE: loop exit
PB: predicated region body
PF: predicated region fallthrough
CT: control target
= control target key end

     0   :  { %s126_s0 = inlined_call_operand.vmem [shape: f32[5], index: 0, kind: input, shape index: {}]   ;;  %s127_s1 = inlined_call_operand.vmem [shape: f32[6,1,128], index: 1, kind: input, shape index: {}]   ;;  %s128_s2 = inlined_call_operand.vmem [shape: f32[1,1,128], index: 2, kind: output, shape index: {}]  }
   0x1   :  { %s7_s11 = sshll.u32 %s126_s0, 4  ;;  %s8_s11 = int_to_ptr.vmem [resolvable:$true] %s7_s11 }
   0x2   :  { %s72_s12 = scalar_lea.vmem %s8_s11, 16  ;;  %p77_p1 = scmp.lt.s32.totalorder %s8_s11, %s8_s11 }
   0x3   :  { %p73_p0 = scmp.ne.s32.totalorder %s8_s11, %s72_s12  ;;  %p78_p2 = scmp.lt.s32.totalorder %s72_s12, %s72_s12 }
   0x5   :  { %p79_p3 = por %p78_p2, %p77_p1 }
   0x7   :  { %p80_p4 = pnand %p79_p3, %p73_p0 }
   0x9   :  { %83 = shalt.err (!%p80_p4)  }
   0xa   :  { %s86_s13 = smov [#allocation3]  }
   0xb   :  { %10 = dma.vmem_to_smem %s8_s11, 16, %s86_s13, [#allocation2] }
   0xc   :  { %84 = dma.done.wait [#allocation2], 16 }
   0xd   :  { %85 = vsyncadd [#allocation2], 4294967280 }
   0xe   :  { %12 = sfence }
   0xf   :  { %s62_s14 = sld [smem:[#allocation3 + $0x3]]  ;;  %s29_s15 = sld [smem:[#allocation3]]  ;;  %v15_v0 = vld [vmem:[%s127_s1] sm:$0x1]  ;;  %v57_v1 = vld [vmem:[%s127_s1 + $0x1] sm:$0x1] }
  0x10   :  { %s63_s16 = sld [smem:[#allocation3 + $0x1]]  ;;  %s64_s17 = sld [smem:[#allocation3 + $0x2]]  ;;  %v58_v2 = vld [vmem:[%s127_s1 + $0x2] sm:$0x1]  ;;  %v59_v16 = vld [vmem:[%s127_s1 + $0x3] sm:$0x1] }
  0x11   :  { %s65_s23 = sld [smem:[#allocation3 + $0x4]]  ;;  %v60_v17 = vld [vmem:[%s127_s1 + $0x4] sm:$0x1]  ;;  %v61_v19 = vld [vmem:[%s127_s1 + $0x5] sm:$0x1] }
  0x12   :  { %v24_v18 = vmul.f32 %v60_v17, %v59_v16 }
  0x14   :  { %v27_v21 = vadd.f32 %v61_v19, %v24_v18 }
  0x15   :  { %v30_v3 = vstv %s29_s15  ;;  %v32_v4 = vstv %s62_s14 }
  0x16   :  { %v31_v5 = vmul.f32 %v30_v3, %v15_v0  ;;  %v35_v6 = vstv %s63_s16  ;;  %v39_v7 = vstv %s64_s17 }
  0x17   :  { %v36_v8 = vmul.f32 %v57_v1, %v35_v6  ;;  %v40_v10 = vmul.f32 %v58_v2, %v39_v7  ;;  %v49_v20 = vstv %s65_s23 }
  0x18   :  { %v33_v9 = vadd.f32 %v32_v4, %v31_v5 }
  0x1a   :  { %v37_v11 = vadd.f32 %v36_v8, %v33_v9 }
  0x1c   :  { %v41_v12 = vadd.f32 %v40_v10, %v37_v11 }
  0x1e   :  { %v66_v13 = vmul.f32 -1.442695, %v41_v12 }
  0x20   :  { %68 = vpow2.f32 %v66_v13 }
  0x2a   :  { %v69_v14 = vpop.eup %68 }
  0x2b   :  { %v46_v15 = vadd.f32 1.0, %v69_v14 }
  0x2d   :  { %70 = vrcp.f32 %v46_v15 }
  0x37   :  { %v71_v22 = vpop.eup %70 }
  0x38   :  { %v50_v23 = vsub.f32 %v71_v22, %v49_v20 }
  0x3a   :  { %v51_v24 = vadd.f32 %v50_v23, %v27_v21 }
  0x3c   :  { %52 = vst [vmem:[%s128_s2] sm:$0x1] %v51_v24 }

</bundles_post_ra>
